<compile_context>
chip_gen: v7x
topology: tpu7x:2x2x1
jax: 0.10.0
libtpu: 0.0.40
codegen_flags: <defaults>
</compile_context>

<pallas_src>
import functools

import jax
import jax.numpy as jnp
from jax.experimental import pallas as pl
from jax.experimental.pallas import tpu as pltpu


def _round_up(v, m):
    return ((v + m - 1) // m) * m


def _softplus(x):
    # numerically-stable Softplus (beta=1), matches torch.nn.Softplus
    return jnp.maximum(x, 0.0) + jnp.log1p(jnp.exp(-jnp.abs(x)))


def fc_encoder_kernel(
    x_ref,                 # (TM, P*D) bf16   streamed packed row tile
    aux_ref,               # (K, TM, P*D) bf16: [eps1, eps2, (keep-mask)]
    w1_ref, b1_ref,        # (P*D, P*D) bf16, (1, P*D) f32   linear1 (block-diag)
    w2_ref, b2_ref,        # (P*D, P*D) bf16, (1, P*D) f32   linear2 (block-diag)
    we_ref, be_ref,        # (P*D, P*D) bf16, (1, P*D) f32   AddEps.linear (shared, block-diag)
    wo_ref, bo_ref,        # (P*D, P*L) bf16, (1, P*L) f32   linear_o (block-diag, /keep_prob folded)
    out_ref,               # (TM, P*L) f32
    *,
    use_dropout,           # static
):
    f32 = jnp.float32
    bf16 = jnp.bfloat16

    # ---- AddEps path: two small dots against the shared, VMEM-resident weight ----
    e1 = jnp.tanh(jnp.dot(aux_ref[0], we_ref[...], preferred_element_type=f32) + be_ref[...])
    e2 = jnp.tanh(jnp.dot(aux_ref[1], we_ref[...], preferred_element_type=f32) + be_ref[...])

    # ---- linear1 + Softplus, then AddEps ----
    h1 = _softplus(jnp.dot(x_ref[...], w1_ref[...], preferred_element_type=f32) + b1_ref[...])
    y1 = (e1 + h1).astype(bf16)

    # ---- linear2 + Softplus, then AddEps ----
    h2 = _softplus(jnp.dot(y1, w2_ref[...], preferred_element_type=f32) + b2_ref[...])
    y2 = e2 + h2

    # ---- Dropout: streamed 0/1 keep-mask; 1/keep_prob already folded into wo ----
    if use_dropout:
        y2 = y2 * aux_ref[2].astype(f32)

    # ---- linear_o (lane-dense P*L-wide output store) ----
    out_ref[...] = (
        jnp.dot(y2.astype(bf16), wo_ref[...], preferred_element_type=f32) + bo_ref[...]
    ).astype(out_ref.dtype)


def _block_diag(w, p):
    return jax.scipy.linalg.block_diag(*([w] * p))


def _dropout_keep_mask(seed, n, d, keep_prob):
    key = jax.random.PRNGKey(seed)
    return jax.random.bernoulli(key, keep_prob, (n, d)).astype(jnp.float32)


def fc_encoder_no_res(x, params, eps1, eps2, *, dropout_p=0.2, seed=0,
                      tile_rows=8192, pack=None):
    """FCEncoderNoRes forward.

    x, eps1, eps2 : (..., D) arrays (leading dims flattened internally)
    params        : pre-transposed weights w1/w2/we/wo (in, out) and biases b1/b2/be/bo (1, out)
    dropout_p     : 0.0 -> eval mode; >0 -> training mode (host-generated keep-mask from `seed`)
    pack          : lane-packing factor P (None -> 8; use 4 on v5e whose MXU is 128-wide)
    """
    lead = x.shape[:-1]
    D = x.shape[-1]
    L = params["wo"].shape[1]

    if pack is None:
        try:
            kind = jax.devices()[0].device_kind.lower()
        except Exception:
            kind = ""
        pack = 4 if "v5" in kind else 8
    P = int(pack)

    bf16 = jnp.bfloat16
    f32 = jnp.float32

    x2 = x.reshape(-1, D)
    e1 = eps1.reshape(-1, D)
    e2 = eps2.reshape(-1, D)
    N = x2.shape[0]

    # Row tile: multiple of P*8 so the packed tile keeps 8-sublane alignment.
    gran = 8 * P
    tn = min(int(tile_rows), _round_up(N, gran))
    tn = max(gran, (tn // gran) * gran)
    n_pad = _round_up(N, tn)
    # Keep at least 2 grid steps when there is enough work (feeds both v7x TensorCores).
    if n_pad // tn < 2 and N > 2 * gran:
        tn = _round_up(-(-N // 2), gran)
        n_pad = _round_up(N, tn)

    keep_prob = float(1.0 - dropout_p)
    use_dropout = keep_prob < 1.0

    def pad_pack(a):
        a = a.astype(f32)
        if n_pad != N:
            a = jnp.pad(a, ((0, n_pad - N), (0, 0)))
        return a.reshape(n_pad // P, P * D).astype(bf16)

    x_p = pad_pack(x2)
    aux_list = [pad_pack(e1), pad_pack(e2)]
    if use_dropout:
        aux_list.append(pad_pack(_dropout_keep_mask(seed, N, D, keep_prob)))
    aux = jnp.stack(aux_list, axis=0)          # (K, n_pad//P, P*D) bf16 -> one DMA stream
    K = aux.shape[0]

    # Block-diagonal lane-packed weights (VMEM-resident); biases tiled to match.
    w1 = _block_diag(params["w1"].astype(bf16), P)
    w2 = _block_diag(params["w2"].astype(bf16), P)
    we = _block_diag(params["we"].astype(bf16), P)
    wo_eff = params["wo"] / keep_prob if use_dropout else params["wo"]
    wo = _block_diag(wo_eff.astype(bf16), P)
    b1 = jnp.tile(params["b1"].astype(f32), (1, P))
    b2 = jnp.tile(params["b2"].astype(f32), (1, P))
    be = jnp.tile(params["be"].astype(f32), (1, P))
    bo = jnp.tile(params["bo"].astype(f32), (1, P))

    PD, PL = P * D, P * L
    tm = tn // P
    m_pad = n_pad // P

    def row_spec(shape):
        return pl.BlockSpec(shape, lambda i: (i, 0))

    def fixed_spec(shape):
        return pl.BlockSpec(shape, lambda i: (0,) * len(shape))

    kernel = functools.partial(fc_encoder_kernel, use_dropout=use_dropout)

    out = pl.pallas_call(
        kernel,
        out_shape=jax.ShapeDtypeStruct((m_pad, PL), f32),
        grid=(m_pad // tm,),
        in_specs=[
            row_spec((tm, PD)),                               # x (packed)
            pl.BlockSpec((K, tm, PD), lambda i: (0, i, 0)),   # eps1 / eps2 / (mask) stack
            fixed_spec((PD, PD)), fixed_spec((1, PD)),        # w1, b1
            fixed_spec((PD, PD)), fixed_spec((1, PD)),        # w2, b2
            fixed_spec((PD, PD)), fixed_spec((1, PD)),        # we, be
            fixed_spec((PD, PL)), fixed_spec((1, PL)),        # wo, bo
        ],
        out_specs=row_spec((tm, PL)),
        compiler_params=pltpu.CompilerParams(
            dimension_semantics=("parallel",),
            vmem_limit_bytes=32 * 1024 * 1024,
        ),
    )(x_p, aux, w1, b1, w2, b2, we, be, wo, bo)

    out = out.reshape(n_pad, L)[:N]
    return out.reshape(lead + (L,))


def _init_linear(key, fan_in, fan_out):
    """Deterministic init mirroring nn.Linear shapes (returned as (in, out))."""
    k_w, k_b = jax.random.split(key)
    bound = 1.0 / jnp.sqrt(fan_in)
    w = jax.random.uniform(k_w, (fan_in, fan_out), jnp.float32, -bound, bound)
    b = jax.random.uniform(k_b, (1, fan_out), jnp.float32, -bound, bound)
    return w, b


def reference_forward(x, params, eps1, eps2, drop_mask=None, keep_prob=1.0):
    """Pure-JAX reference of FCEncoderNoRes.forward (mirrors the kernel's bf16 matmul inputs)."""
    bf16 = jnp.bfloat16

    def mm(a, w):
        return jnp.dot(a.astype(bf16), w.astype(bf16), preferred_element_type=jnp.float32)

    h1 = jax.nn.softplus(mm(x, params["w1"]) + params["b1"])
    y1 = jnp.tanh(mm(eps1, params["we"]) + params["be"]) + h1
    h2 = jax.nn.softplus(mm(y1, params["w2"]) + params["b2"])
    y2 = jnp.tanh(mm(eps2, params["we"]) + params["be"]) + h2
    wo = params["wo"]
    if drop_mask is not None:
        y2 = y2 * drop_mask
        wo = wo / keep_prob
    return mm(y2, wo) + params["bo"]


if __name__ == "__main__":
    # small shapes implied by the module: x is (batch, seq, dim_rnn)
    batch, seq = 2, 8
    dim_rnn, dim_latent = 32, 16

    key = jax.random.PRNGKey(0)
    kx, k1, k2, ke, ko, kn1, kn2 = jax.random.split(key, 7)

    x = jax.random.normal(kx, (batch, seq, dim_rnn), jnp.float32)

    params = {}
    params["w1"], params["b1"] = _init_linear(k1, dim_rnn, dim_rnn)
    params["w2"], params["b2"] = _init_linear(k2, dim_rnn, dim_rnn)
    params["we"], params["be"] = _init_linear(ke, dim_rnn, dim_rnn)   # AddEps.linear (shared)
    params["wo"], params["bo"] = _init_linear(ko, dim_rnn, dim_latent)

    # deterministic stand-ins for torch.randn_like inside the two AddEps calls
    eps1 = jax.random.normal(kn1, x.shape, jnp.float32)
    eps2 = jax.random.normal(kn2, x.shape, jnp.float32)

    # --- eval-style pass (dropout off): exact-path check vs pure-JAX reference ---
    out_eval = jax.block_until_ready(
        fc_encoder_no_res(x, params, eps1, eps2, dropout_p=0.0, seed=0))
    ref_eval = reference_forward(x, params, eps1, eps2)
    assert out_eval.shape == (batch, seq, dim_latent)
    assert jnp.allclose(out_eval, ref_eval, atol=3e-2, rtol=3e-2), "eval mismatch vs reference"

    # --- training-style pass (dropout p=0.2; host-generated keep-mask, scale folded into wo) ---
    p_drop, seed = 0.2, 123
    out_train = jax.block_until_ready(
        fc_encoder_no_res(x, params, eps1, eps2, dropout_p=p_drop, seed=seed))
    mask = _dropout_keep_mask(seed, batch * seq, dim_rnn, 1.0 - p_drop).reshape(x.shape)
    ref_train = reference_forward(x, params, eps1, eps2, drop_mask=mask, keep_prob=1.0 - p_drop)
    assert out_train.shape == (batch, seq, dim_latent)
    assert jnp.allclose(out_train, ref_train, atol=3e-2, rtol=3e-2), "train mismatch vs reference"
    assert bool(jnp.all(jnp.isfinite(out_train)))
    assert not jnp.allclose(out_train, out_eval)   # dropout must actually perturb the output

    print("KERNEL_OK")
</pallas_src>

<mosaic_0001>
module attributes {stable_mosaic.version = 11 : i64} {
  func.func @fc_encoder_kernel(%arg0: i32, %arg1: memref<8x256xbf16, #tpu.memory_space<vmem>>, %arg2: memref<2x8x256xbf16, #tpu.memory_space<vmem>>, %arg3: memref<256x256xbf16, #tpu.memory_space<vmem>>, %arg4: memref<1x256xf32, #tpu.memory_space<vmem>>, %arg5: memref<256x256xbf16, #tpu.memory_space<vmem>>, %arg6: memref<1x256xf32, #tpu.memory_space<vmem>>, %arg7: memref<256x256xbf16, #tpu.memory_space<vmem>>, %arg8: memref<1x256xf32, #tpu.memory_space<vmem>>, %arg9: memref<256x128xbf16, #tpu.memory_space<vmem>>, %arg10: memref<1x128xf32, #tpu.memory_space<vmem>>, %arg11: memref<8x128xf32, #tpu.memory_space<vmem>>) attributes {dimension_semantics = [#tpu.dimension_semantics<parallel>], iteration_bounds = array<i64: 1>, scalar_prefetch = 0 : i64, scratch_operands = 0 : i64, tpu.core_type = #tpu.core_type<tc>, window_params = [{transform_indices = @transform_0, window_bounds = array<i64: 8, 256>}, {transform_indices = @transform_1, window_bounds = array<i64: 2, 8, 256>}, {pipeline_mode = #tpu.pipeline_mode<synchronous>, transform_indices = @transform_2, window_bounds = array<i64: 256, 256>}, {pipeline_mode = #tpu.pipeline_mode<synchronous>, transform_indices = @transform_3, window_bounds = array<i64: 1, 256>}, {pipeline_mode = #tpu.pipeline_mode<synchronous>, transform_indices = @transform_4, window_bounds = array<i64: 256, 256>}, {pipeline_mode = #tpu.pipeline_mode<synchronous>, transform_indices = @transform_5, window_bounds = array<i64: 1, 256>}, {pipeline_mode = #tpu.pipeline_mode<synchronous>, transform_indices = @transform_6, window_bounds = array<i64: 256, 256>}, {pipeline_mode = #tpu.pipeline_mode<synchronous>, transform_indices = @transform_7, window_bounds = array<i64: 1, 256>}, {pipeline_mode = #tpu.pipeline_mode<synchronous>, transform_indices = @transform_8, window_bounds = array<i64: 256, 128>}, {pipeline_mode = #tpu.pipeline_mode<synchronous>, transform_indices = @transform_9, window_bounds = array<i64: 1, 128>}, {transform_indices = @transform_10, window_bounds = array<i64: 8, 128>}]} {
    %c0 = arith.constant 0 : index
    %c0_0 = arith.constant 0 : index
    %c0_1 = arith.constant 0 : index
    %0 = vector.load %arg2[%c0, %c0_0, %c0_1] : memref<2x8x256xbf16, #tpu.memory_space<vmem>>, vector<1x8x256xbf16>
    %1 = vector.shape_cast %0 : vector<1x8x256xbf16> to vector<8x256xbf16>
    %c0_2 = arith.constant 0 : index
    %c0_3 = arith.constant 0 : index
    %2 = vector.load %arg7[%c0_2, %c0_3] : memref<256x256xbf16, #tpu.memory_space<vmem>>, vector<256x256xbf16>
    %cst = arith.constant dense<0.000000e+00> : vector<8x256xf32>
    %3 = tpu.matmul %1, %2, %cst {dimension_numbers = #tpu.dot_dimension_numbers<[1], [0], [0], [1], [0, 0, 1, 1], [], []>} : vector<8x256xbf16>, vector<256x256xbf16>, vector<8x256xf32> -> vector<8x256xf32>
    %c0_4 = arith.constant 0 : index
    %c0_5 = arith.constant 0 : index
    %4 = vector.load %arg8[%c0_4, %c0_5] : memref<1x256xf32, #tpu.memory_space<vmem>>, vector<1x256xf32>
    %5 = vector.broadcast %4 : vector<1x256xf32> to vector<8x256xf32>
    %6 = arith.addf %3, %5 : vector<8x256xf32>
    %7 = math.tanh %6 : vector<8x256xf32>
    %c1 = arith.constant 1 : index
    %c0_6 = arith.constant 0 : index
    %c0_7 = arith.constant 0 : index
    %8 = vector.load %arg2[%c1, %c0_6, %c0_7] : memref<2x8x256xbf16, #tpu.memory_space<vmem>>, vector<1x8x256xbf16>
    %9 = vector.shape_cast %8 : vector<1x8x256xbf16> to vector<8x256xbf16>
    %c0_8 = arith.constant 0 : index
    %c0_9 = arith.constant 0 : index
    %10 = vector.load %arg7[%c0_8, %c0_9] : memref<256x256xbf16, #tpu.memory_space<vmem>>, vector<256x256xbf16>
    %cst_10 = arith.constant dense<0.000000e+00> : vector<8x256xf32>
    %11 = tpu.matmul %9, %10, %cst_10 {dimension_numbers = #tpu.dot_dimension_numbers<[1], [0], [0], [1], [0, 0, 1, 1], [], []>} : vector<8x256xbf16>, vector<256x256xbf16>, vector<8x256xf32> -> vector<8x256xf32>
    %c0_11 = arith.constant 0 : index
    %c0_12 = arith.constant 0 : index
    %12 = vector.load %arg8[%c0_11, %c0_12] : memref<1x256xf32, #tpu.memory_space<vmem>>, vector<1x256xf32>
    %13 = vector.broadcast %12 : vector<1x256xf32> to vector<8x256xf32>
    %14 = arith.addf %11, %13 : vector<8x256xf32>
    %15 = math.tanh %14 : vector<8x256xf32>
    %c0_13 = arith.constant 0 : index
    %c0_14 = arith.constant 0 : index
    %16 = vector.load %arg1[%c0_13, %c0_14] : memref<8x256xbf16, #tpu.memory_space<vmem>>, vector<8x256xbf16>
    %c0_15 = arith.constant 0 : index
    %c0_16 = arith.constant 0 : index
    %17 = vector.load %arg3[%c0_15, %c0_16] : memref<256x256xbf16, #tpu.memory_space<vmem>>, vector<256x256xbf16>
    %cst_17 = arith.constant dense<0.000000e+00> : vector<8x256xf32>
    %18 = tpu.matmul %16, %17, %cst_17 {dimension_numbers = #tpu.dot_dimension_numbers<[1], [0], [0], [1], [0, 0, 1, 1], [], []>} : vector<8x256xbf16>, vector<256x256xbf16>, vector<8x256xf32> -> vector<8x256xf32>
    %c0_18 = arith.constant 0 : index
    %c0_19 = arith.constant 0 : index
    %19 = vector.load %arg4[%c0_18, %c0_19] : memref<1x256xf32, #tpu.memory_space<vmem>>, vector<1x256xf32>
    %20 = vector.broadcast %19 : vector<1x256xf32> to vector<8x256xf32>
    %21 = arith.addf %18, %20 : vector<8x256xf32>
    %cst_20 = arith.constant 0.000000e+00 : f32
    %22 = vector.broadcast %cst_20 : f32 to vector<8x256xf32>
    %23 = arith.maximumf %21, %22 : vector<8x256xf32>
    %24 = math.absf %21 : vector<8x256xf32>
    %cst_21 = arith.constant 0.000000e+00 : f32
    %25 = vector.broadcast %cst_21 : f32 to vector<8x256xf32>
    %26 = arith.subf %25, %24 : vector<8x256xf32>
    %27 = math.exp %26 : vector<8x256xf32>
    %28 = math.log1p %27 : vector<8x256xf32>
    %29 = arith.addf %23, %28 : vector<8x256xf32>
    %30 = arith.addf %7, %29 : vector<8x256xf32>
    %31 = arith.truncf %30 : vector<8x256xf32> to vector<8x256xbf16>
    %c0_22 = arith.constant 0 : index
    %c0_23 = arith.constant 0 : index
    %32 = vector.load %arg5[%c0_22, %c0_23] : memref<256x256xbf16, #tpu.memory_space<vmem>>, vector<256x256xbf16>
    %cst_24 = arith.constant dense<0.000000e+00> : vector<8x256xf32>
    %33 = tpu.matmul %31, %32, %cst_24 {dimension_numbers = #tpu.dot_dimension_numbers<[1], [0], [0], [1], [0, 0, 1, 1], [], []>} : vector<8x256xbf16>, vector<256x256xbf16>, vector<8x256xf32> -> vector<8x256xf32>
    %c0_25 = arith.constant 0 : index
    %c0_26 = arith.constant 0 : index
    %34 = vector.load %arg6[%c0_25, %c0_26] : memref<1x256xf32, #tpu.memory_space<vmem>>, vector<1x256xf32>
    %35 = vector.broadcast %34 : vector<1x256xf32> to vector<8x256xf32>
    %36 = arith.addf %33, %35 : vector<8x256xf32>
    %cst_27 = arith.constant 0.000000e+00 : f32
    %37 = vector.broadcast %cst_27 : f32 to vector<8x256xf32>
    %38 = arith.maximumf %36, %37 : vector<8x256xf32>
    %39 = math.absf %36 : vector<8x256xf32>
    %cst_28 = arith.constant 0.000000e+00 : f32
    %40 = vector.broadcast %cst_28 : f32 to vector<8x256xf32>
    %41 = arith.subf %40, %39 : vector<8x256xf32>
    %42 = math.exp %41 : vector<8x256xf32>
    %43 = math.log1p %42 : vector<8x256xf32>
    %44 = arith.addf %38, %43 : vector<8x256xf32>
    %45 = arith.addf %15, %44 : vector<8x256xf32>
    %46 = arith.truncf %45 : vector<8x256xf32> to vector<8x256xbf16>
    %c0_29 = arith.constant 0 : index
    %c0_30 = arith.constant 0 : index
    %47 = vector.load %arg9[%c0_29, %c0_30] : memref<256x128xbf16, #tpu.memory_space<vmem>>, vector<256x128xbf16>
    %cst_31 = arith.constant dense<0.000000e+00> : vector<8x128xf32>
    %48 = tpu.matmul %46, %47, %cst_31 {dimension_numbers = #tpu.dot_dimension_numbers<[1], [0], [0], [1], [0, 0, 1, 1], [], []>} : vector<8x256xbf16>, vector<256x128xbf16>, vector<8x128xf32> -> vector<8x128xf32>
    %c0_32 = arith.constant 0 : index
    %c0_33 = arith.constant 0 : index
    %49 = vector.load %arg10[%c0_32, %c0_33] : memref<1x128xf32, #tpu.memory_space<vmem>>, vector<1x128xf32>
    %50 = vector.broadcast %49 : vector<1x128xf32> to vector<8x128xf32>
    %51 = arith.addf %48, %50 : vector<8x128xf32>
    %c0_34 = arith.constant 0 : index
    %c0_35 = arith.constant 0 : index
    %52 = vector.load %arg11[%c0_34, %c0_35] : memref<8x128xf32, #tpu.memory_space<vmem>>, vector<8x128xf32>
    tpu.vector_store %arg11[%c0_34, %c0_35], %51 {strides = array<i32>} : memref<8x128xf32, #tpu.memory_space<vmem>>, vector<8x128xf32>,
    return
  }
  func.func @transform_0(%arg0: i32) -> (i32, i32) {
    %c0_i32 = arith.constant 0 : i32
    %c0_i32_0 = arith.constant 0 : i32
    return %arg0, %c0_i32 : i32, i32
  }
  func.func @transform_1(%arg0: i32) -> (i32, i32, i32) {
    %c0_i32 = arith.constant 0 : i32
    %c0_i32_0 = arith.constant 0 : i32
    %c0_i32_1 = arith.constant 0 : i32
    return %c0_i32, %arg0, %c0_i32_0 : i32, i32, i32
  }
  func.func @transform_2(%arg0: i32) -> (i32, i32) {
    %c0_i32 = arith.constant 0 : i32
    %c0_i32_0 = arith.constant 0 : i32
    %c0_i32_1 = arith.constant 0 : i32
    return %c0_i32, %c0_i32_0 : i32, i32
  }
  func.func @transform_3(%arg0: i32) -> (i32, i32) {
    %c0_i32 = arith.constant 0 : i32
    %c0_i32_0 = arith.constant 0 : i32
    %c0_i32_1 = arith.constant 0 : i32
    return %c0_i32, %c0_i32_0 : i32, i32
  }
  func.func @transform_4(%arg0: i32) -> (i32, i32) {
    %c0_i32 = arith.constant 0 : i32
    %c0_i32_0 = arith.constant 0 : i32
    %c0_i32_1 = arith.constant 0 : i32
    return %c0_i32, %c0_i32_0 : i32, i32
  }
  func.func @transform_5(%arg0: i32) -> (i32, i32) {
    %c0_i32 = arith.constant 0 : i32
    %c0_i32_0 = arith.constant 0 : i32
    %c0_i32_1 = arith.constant 0 : i32
    return %c0_i32, %c0_i32_0 : i32, i32
  }
  func.func @transform_6(%arg0: i32) -> (i32, i32) {
    %c0_i32 = arith.constant 0 : i32
    %c0_i32_0 = arith.constant 0 : i32
    %c0_i32_1 = arith.constant 0 : i32
    return %c0_i32, %c0_i32_0 : i32, i32
  }
  func.func @transform_7(%arg0: i32) -> (i32, i32) {
    %c0_i32 = arith.constant 0 : i32
    %c0_i32_0 = arith.constant 0 : i32
    %c0_i32_1 = arith.constant 0 : i32
    return %c0_i32, %c0_i32_0 : i32, i32
  }
  func.func @transform_8(%arg0: i32) -> (i32, i32) {
    %c0_i32 = arith.constant 0 : i32
    %c0_i32_0 = arith.constant 0 : i32
    %c0_i32_1 = arith.constant 0 : i32
    return %c0_i32, %c0_i32_0 : i32, i32
  }
  func.func @transform_9(%arg0: i32) -> (i32, i32) {
    %c0_i32 = arith.constant 0 : i32
    %c0_i32_0 = arith.constant 0 : i32
    %c0_i32_1 = arith.constant 0 : i32
    return %c0_i32, %c0_i32_0 : i32, i32
  }
  func.func @transform_10(%arg0: i32) -> (i32, i32) {
    %c0_i32 = arith.constant 0 : i32
    %c0_i32_0 = arith.constant 0 : i32
    return %arg0, %c0_i32 : i32, i32
  }
}

</mosaic_0001>

<bundles_post_ra>
// kernel: tpu_custom_call.1
= control target key start
LH: loop header
LB: loop body
LE: loop exit
PB: predicated region body
PF: predicated region fallthrough
CT: control target
= control target key end

     0   :  { %15 = vsyncpa [#allocation3], 0  ;;  %s1900_s0 = inlined_call_operand.hbm [shape: bf16[8,256], index: 0, kind: input, shape index: {}]   ;;  %s1901_s1 = inlined_call_operand.hbm [shape: bf16[2,8,256], index: 1, kind: input, shape index: {}]   ;;  %s1902_s2 = inlined_call_operand.hbm [shape: bf16[256,256], index: 2, kind: input, shape index: {}]   ;;  %s1903_s3 = inlined_call_operand.vmem [shape: f32[1,256], index: 3, kind: input, shape index: {}]   ;;  %s1904_s4 = inlined_call_operand.hbm [shape: bf16[256,256], index: 4, kind: input, shape index: {}]   ;;  %s1905_s5 = inlined_call_operand.vmem [shape: f32[1,256], index: 5, kind: input, shape index: {}]   ;;  %s1906_s6 = inlined_call_operand.hbm [shape: bf16[256,256], index: 6, kind: input, shape index: {}]   ;;  %s1907_s7 = inlined_call_operand.vmem [shape: f32[1,256], index: 7, kind: input, shape index: {}]   ;;  %s1908_s8 = inlined_call_operand.hbm [shape: bf16[256,128], index: 8, kind: input, shape index: {}]   ;;  %s1909_s9 = inlined_call_operand.vmem [shape: f32[1,128], index: 9, kind: input, shape index: {}]   ;;  %s1910_s10 = inlined_call_operand.hbm [shape: f32[8,128], index: 10, kind: output, shape index: {}]  }
   0x1   :  { %16 = vsyncpa [#allocation6], 0 }
   0x2   :  { %17 = vsyncpa [#allocation9], 0 }
   0x3   :  { %18 = vsyncpa [#allocation12], 0 }
   0x4   :  { %19 = vsyncpa [#allocation4], 0  ;;  %s1690_s13 = smov [#allocation5]   ;;  %s1526_s17 = scalar_lea.hbm %s1901_s1, 256 }
   0x5   :  { %s35_s14 = sshll.u32 %s1690_s13, 4  ;;  %p1527_p0 = scmp.ne.s32.totalorder %s1901_s1, %s1526_s17  ;;  %s36_s14 = int_to_ptr.vmem [resolvable:$true] %s35_s14 }
   0x6   :  { %p1530_p1 = scmp.lt.u32.totalorder %s1526_s17, %s1901_s1 }
   0x8   :  { %p1532_p2 = pnand %p1530_p1, %p1527_p0 }
   0xa   :  { %1535 = shalt.err (!%p1532_p2)
}
   0xb   :  { %s1536_s22 = scalar_lea.vmem %s36_s14, 256  ;;  %p1541_p4 = scmp.lt.s32.totalorder %s36_s14, %s36_s14 }
   0xc   :  { %p1537_p3 = scmp.ne.s32.totalorder %s36_s14, %s1536_s22  ;;  %p1542_p5 = scmp.lt.s32.totalorder %s1536_s22, %s1536_s22 }
   0xe   :  { %p1543_p6 = por %p1542_p5, %p1541_p4 }
  0x10   :  { %p1544_p7 = pnand %p1543_p6, %p1537_p3 }
  0x12   :  { %1547 = shalt.err (!%p1544_p7)
}
  0x13   :  { %s1691_s23 = smov 128   ;;  %s1692_s24 = smov 8  }
  0x14   :  { %41 = dma.hbm_to_vmem [thread:$0]  %s1901_s1, 256, %s36_s14, [#allocation6], %s1691_s23, %s1691_s23, %s1692_s24  }
  0x15   :  { %s1693_s27 = smov [#allocation8]   ;;  %s1694_s29 = smov [#allocation2]  }
  0x16   :  { %s61_s28 = sshll.u32 %s1693_s27, 4  ;;  %s26_s30 = sshll.u32 %s1694_s29, 4  ;;  %s62_s28 = int_to_ptr.vmem [resolvable:$true] %s61_s28  ;;  %s27_s30 = int_to_ptr.vmem [resolvable:$true] %s26_s30 }
  0x17   :  { %s1548_s13 = scalar_lea.hbm %s1904_s4, 4096 }
  0x18   :  { %p1549_p8 = scmp.ne.s32.totalorder %s1904_s4, %s1548_s13  ;;  %p1552_p9 = scmp.lt.u32.totalorder %s1548_s13, %s1904_s4 }
  0x1a   :  { %p1554_p10 = pnand %p1552_p9, %p1549_p8 }
  0x1c   :  { %1557 = shalt.err (!%p1554_p10)
}
  0x1d   :  { %s1558_s1 = scalar_lea.vmem %s62_s28, 4096  ;;  %p1563_p12 = scmp.lt.s32.totalorder %s62_s28, %s62_s28 }
  0x1e   :  { %p1559_p11 = scmp.ne.s32.totalorder %s62_s28, %s1558_s1  ;;  %p1564_p13 = scmp.lt.s32.totalorder %s1558_s1, %s1558_s1 }
  0x20   :  { %p1565_p0 = por %p1564_p13, %p1563_p12 }
  0x22   :  { %p1566_p1 = pnand %p1565_p0, %p1559_p11 }
  0x24   :  { %1569 = shalt.err (!%p1566_p1)
}
  0x25   :  { %67 = dma.hbm_to_vmem [thread:$0]  %s1904_s4, 4096, %s62_s28, [#allocation9], %s1691_s23, %s1691_s23, %s1692_s24  }
  0x26   :  { %s1570_s22 = scalar_lea.hbm %s1900_s0, 128 }
  0x27   :  { %p1571_p2 = scmp.ne.s32.totalorder %s1900_s0, %s1570_s22  ;;  %p1574_p3 = scmp.lt.u32.totalorder %s1570_s22, %s1900_s0 }
  0x29   :  { %p1576_p4 = pnand %p1574_p3, %p1571_p2 }
  0x2b   :  { %1579 = shalt.err (!%p1576_p4)
}
  0x2c   :  { %s1580_s11 = scalar_lea.vmem %s27_s30, 128  ;;  %p1585_p6 = scmp.lt.s32.totalorder %s27_s30, %s27_s30 }
  0x2d   :  { %p1581_p5 = scmp.ne.s32.totalorder %s27_s30, %s1580_s11  ;;  %p1586_p7 = scmp.lt.s32.totalorder %s1580_s11, %s1580_s11 }
  0x2f   :  { %p1587_p8 = por %p1586_p7, %p1585_p6 }
  0x31   :  { %p1588_p9 = pnand %p1587_p8, %p1581_p5 }
  0x33   :  { %1591 = shalt.err (!%p1588_p9)
}
  0x34   :  { %29 = dma.hbm_to_vmem [thread:$0]  %s1900_s0, 128, %s27_s30, [#allocation3]  }
  0x35   :  { %s1695_s12 = smov [#allocation7]   ;;  %s1696_s15 = smov [#allocation10]  }
  0x36   :  { %s47_s13 = sshll.u32 %s1695_s12, 4  ;;  %s75_s16 = sshll.u32 %s1696_s15, 4  ;;  %s48_s13 = int_to_ptr.vmem [resolvable:$true] %s47_s13  ;;  %s76_s16 = int_to_ptr.vmem [resolvable:$true] %s75_s16 }
  0x37   :  { %s1592_s1 = scalar_lea.hbm %s1902_s2, 4096 }
  0x38   :  { %p1593_p10 = scmp.ne.s32.totalorder %s1902_s2, %s1592_s1  ;;  %p1596_p11 = scmp.lt.u32.totalorder %s1592_s1, %s1902_s2 }
  0x3a   :  { %p1598_p12 = pnand %p1596_p11, %p1593_p10 }
  0x3c   :  { %1601 = shalt.err (!%p1598_p12)
}
  0x3d   :  { %s1602_s0 = scalar_lea.vmem %s48_s13, 4096  ;;  %p1607_p0 = scmp.lt.s32.totalorder %s48_s13, %s48_s13 }
  0x3e   :  { %p1603_p13 = scmp.ne.s32.totalorder %s48_s13, %s1602_s0  ;;  %p1608_p1 = scmp.lt.s32.totalorder %s1602_s0, %s1602_s0 }
  0x40   :  { %p1609_p2 = por %p1608_p1, %p1607_p0 }
  0x42   :  { %p1610_p3 = pnand %p1609_p2, %p1603_p13 }
  0x44   :  { %1613 = shalt.err (!%p1610_p3)
}
  0x45   :  { %53 = dma.hbm_to_vmem [thread:$0]  %s1902_s2, 4096, %s48_s13, [#allocation6], %s1691_s23, %s1691_s23, %s1692_s24  }
  0x46   :  { %s1614_s27 = scalar_lea.hbm %s1906_s6, 4096 }
  0x47   :  { %p1615_p4 = scmp.ne.s32.totalorder %s1906_s6, %s1614_s27  ;;  %p1618_p5 = scmp.lt.u32.totalorder %s1614_s27, %s1906_s6 }
  0x49   :  { %p1620_p6 = pnand %p1618_p5, %p1615_p4 }
  0x4b   :  { %1623 = shalt.err (!%p1620_p6)
}
  0x4c   :  { %s1624_s12 = scalar_lea.vmem %s76_s16, 4096  ;;  %p1629_p8 = scmp.lt.s32.totalorder %s76_s16, %s76_s16 }
  0x4d   :  { %p1625_p7 = scmp.ne.s32.totalorder %s76_s16, %s1624_s12  ;;  %p1630_p9 = scmp.lt.s32.totalorder %s1624_s12, %s1624_s12 }
  0x4f   :  { %p1631_p10 = por %p1630_p9, %p1629_p8 }
  0x51   :  { %p1632_p11 = pnand %p1631_p10, %p1625_p7 }
  0x53   :  { %1635 = shalt.err (!%p1632_p11)
}
  0x54   :  { %81 = dma.hbm_to_vmem [thread:$0]  %s1906_s6, 4096, %s76_s16, [#allocation9], %s1691_s23, %s1691_s23, %s1692_s24  }
  0x55   :  { %s1697_s15 = smov [#allocation11]   ;;  %s1636_s14 = scalar_lea.hbm %s1908_s8, 2048 }
  0x56   :  { %s89_s17 = sshll.u32 %s1697_s15, 4  ;;  %p1637_p12 = scmp.ne.s32.totalorder %s1908_s8, %s1636_s14  ;;  %s90_s17 = int_to_ptr.vmem [resolvable:$true] %s89_s17 }
  0x57   :  { %p1640_p13 = scmp.lt.u32.totalorder %s1636_s14, %s1908_s8 }
  0x59   :  { %p1642_p0 = pnand %p1640_p13, %p1637_p12 }
  0x5b   :  { %1645 = shalt.err (!%p1642_p0)
}
  0x5c   :  { %s1646_s30 = scalar_lea.vmem %s90_s17, 2048  ;;  %p1651_p2 = scmp.lt.s32.totalorder %s90_s17, %s90_s17 }
  0x5d   :  { %p1647_p1 = scmp.ne.s32.totalorder %s90_s17, %s1646_s30  ;;  %p1652_p3 = scmp.lt.s32.totalorder %s1646_s30, %s1646_s30 }
  0x5f   :  { %p1653_p4 = por %p1652_p3, %p1651_p2 }
  0x61   :  { %p1654_p5 = pnand %p1653_p4, %p1647_p1 }
  0x63   :  { %1657 = shalt.err (!%p1654_p5)
}
  0x64   :  { %s1698_s6 = smov 64   ;;  %s1699_s23 = smov 4  }
  0x65   :  { %95 = dma.hbm_to_vmem [thread:$0]  %s1908_s8, 2048, %s90_s17, [#allocation12], %s1698_s6, %s1698_s6, %s1699_s23  }
  0x66   :  { %1680 = dma.done.wait [#allocation3], 128  }
  0x67   :  { %1681 = vsyncadd [#allocation3], 4294967168 }
  0x68   :  { %1682 = dma.done.wait [#allocation6], 4352  }
  0x69   :  { %1683 = vsyncadd [#allocation6], 4294962944 }
  0x6a   :  { %1684 = dma.done.wait [#allocation9], 8192  }
  0x6b   :  { %1685 = vsyncadd [#allocation9], 4294959104 }
  0x6c   :  { %1686 = dma.done.wait [#allocation12], 2048  }
  0x6d   :  { %1687 = vsyncadd [#allocation12], 4294965248  ;;  %v1336_v0 = vld [vmem:[#allocation10 + $0x4] ss:$8 sps:$4 sm:$0xff]   ;;  %v1338_v1 = vld [vmem:[#allocation10] ss:$8 sps:$4 sm:$0xff]  }
  0x6e   :  { %329 = vmatprep.subr.bf16.mxu0 %v1336_v0  ;;  %v1339_v2 = vld [vmem:[#allocation10 + $0x14] ss:$8 sps:$4 sm:$0xff]   ;;  %381 = vmatprep.subr.bf16.mxu1 %v1336_v0  ;;  %v1341_v3 = vld [vmem:[#allocation10 + $0x10] ss:$8 sps:$4 sm:$0xff]   ;;  %v1342_v4 = vld [vmem:[#allocation10 + $0x24] ss:$8 sps:$4 sm:$0xff]  }
  0x6f   :  { %330 = vmatpush1.bf16.msra.mxu0 %v1338_v1  ;;  %382 = vmatpush1.bf16.msra.mxu1 %v1338_v1  ;;  %v1344_v5 = vld [vmem:[#allocation10 + $0x20] ss:$8 sps:$4 sm:$0xff]   ;;  %v1345_v6 = vld [vmem:[#allocation10 + $0x34] ss:$8 sps:$4 sm:$0xff]   ;;  %v1347_v7 = vld [vmem:[#allocation10 + $0x30] ss:$8 sps:$4 sm:$0xff]  }
  0x70   :  { %331 = vmatprep.subr.bf16.mxu0 %v1339_v2  ;;  %383 = vmatprep.subr.bf16.mxu1 %v1339_v2  ;;  %v1348_v8 = vld [vmem:[#allocation10 + $0x44] ss:$8 sps:$4 sm:$0xff]   ;;  %v1350_v9 = vld [vmem:[#allocation10 + $0x40] ss:$8 sps:$4 sm:$0xff]   ;;  %v1351_v10 = vld [vmem:[#allocation10 + $0x54] ss:$8 sps:$4 sm:$0xff]  }
  0x71   :  { %v1353_v11 = vld [vmem:[#allocation10 + $0x50] ss:$8 sps:$4 sm:$0xff]   ;;  %v1354_v12 = vld [vmem:[#allocation10 + $0x64] ss:$8 sps:$4 sm:$0xff]   ;;  %v1356_v15 = vld [vmem:[#allocation10 + $0x60] ss:$8 sps:$4 sm:$0xff]  }
  0x72   :  { %v1840_v13 = vld [vmem:[#allocation5] sm:$0xff]  ;;  %v1360_v18 = vld [vmem:[#allocation10 + $0x84] ss:$8 sps:$4 sm:$0xff]   ;;  %v1362_v19 = vld [vmem:[#allocation10 + $0x80] ss:$8 sps:$4 sm:$0xff]   ;;  %s1700_s29 = smov [#allocation13]  }
  0x73   :  { %332 = vmatpush1.bf16.msra.mxu0 %v1341_v3  ;;  %384 = vmatpush1.bf16.msra.mxu1 %v1341_v3  ;;  %v1185_v14 = vcombine.high %v1840_v13, %v1840_v13  ;;  %v1357_v16 = vld [vmem:[#allocation10 + $0x74] ss:$8 sps:$4 sm:$0xff]   ;;  %v1359_v17 = vld [vmem:[#allocation10 + $0x70] ss:$8 sps:$4 sm:$0xff]   ;;  %v1366_v22 = vld [vmem:[#allocation10 + $0xa4] ss:$8 sps:$4 sm:$0xff]   ;;  %v1184_v37 = vcombine.low %v1840_v13, %v1840_v13 }
  0x74   :  { %333 = vmatprep.subr.bf16.mxu0 %v1342_v4  ;;  %385 = vmatprep.subr.bf16.mxu1 %v1342_v4  ;;  %v1363_v20 = vld [vmem:[#allocation10 + $0x94] ss:$8 sps:$4 sm:$0xff]   ;;  %v1365_v21 = vld [vmem:[#allocation10 + $0x90] ss:$8 sps:$4 sm:$0xff]   ;;  %v1368_v23 = vld [vmem:[#allocation10 + $0xa0] ss:$8 sps:$4 sm:$0xff]  }
  0x75   :  { %361 = vmatprep.mubr.bf16.mxu0 %v1185_v14  ;;  %v1369_v24 = vld [vmem:[#allocation10 + $0xb4] ss:$8 sps:$4 sm:$0xff]   ;;  %v1371_v25 = vld [vmem:[#allocation10 + $0xb0] ss:$8 sps:$4 sm:$0xff]   ;;  %v1372_v26 = vld [vmem:[#allocation10 + $0xc4] ss:$8 sps:$4 sm:$0xff]  }
  0x76   :  { %v1374_v27 = vld [vmem:[#allocation10 + $0xc0] ss:$8 sps:$4 sm:$0xff]   ;;  %v1375_v28 = vld [vmem:[#allocation10 + $0xd4] ss:$8 sps:$4 sm:$0xff]   ;;  %v1377_v29 = vld [vmem:[#allocation10 + $0xd0] ss:$8 sps:$4 sm:$0xff]  }
  0x77   :  { %334 = vmatpush1.bf16.msra.mxu0 %v1344_v5  ;;  %386 = vmatpush1.bf16.msra.mxu1 %v1344_v5  ;;  %v1378_v30 = vld [vmem:[#allocation10 + $0xe4] ss:$8 sps:$4 sm:$0xff]   ;;  %v1380_v31 = vld [vmem:[#allocation10 + $0xe0] ss:$8 sps:$4 sm:$0xff]   ;;  %v1381_v32 = vld [vmem:[#allocation10 + $0xf4] ss:$8 sps:$4 sm:$0xff]  }
  0x78   :  { %335 = vmatprep.subr.bf16.mxu0 %v1345_v6  ;;  %387 = vmatprep.subr.bf16.mxu1 %v1345_v6  ;;  %v1383_v33 = vld [vmem:[#allocation10 + $0xf0] ss:$8 sps:$4 sm:$0xff]   ;;  %v1388_v34 = vld [vmem:[#allocation7 + $0x4] ss:$8 sps:$4 sm:$0xff]   ;;  %v1386_v36 = vld [vmem:[#allocation7] ss:$8 sps:$4 sm:$0xff]  }
  0x79   :  { %v1844_v35 = vld [vmem:[#allocation2] sm:$0xff]  ;;  %v1391_v38 = vld [vmem:[#allocation7 + $0x14] ss:$8 sps:$4 sm:$0xff]   ;;  %v1389_v40 = vld [vmem:[#allocation7 + $0x10] ss:$8 sps:$4 sm:$0xff]   ;;  %s1172_s11 = sshll.u32 %s1700_s29, 4  ;;  %s1173_s11 = int_to_ptr.vmem [resolvable:$true] %s1172_s11 }
  0x7a   :  { %v1221_v39 = vcombine.high %v1844_v35, %v1844_v35  ;;  %v1394_v41 = vld [vmem:[#allocation7 + $0x24] ss:$8 sps:$4 sm:$0xff]   ;;  %v1392_v42 = vld [vmem:[#allocation7 + $0x20] ss:$8 sps:$4 sm:$0xff]   ;;  %v1397_v43 = vld [vmem:[#allocation7 + $0x34] ss:$8 sps:$4 sm:$0xff]   ;;  %v1220_v5 = vcombine.low %v1844_v35, %v1844_v35  ;;  %p1663_p7 = scmp.lt.s32.totalorder %s1173_s11, %s1173_s11 }
  0x7b   :  { %336 = vmatpush1.bf16.msra.mxu0 %v1347_v7  ;;  %388 = vmatpush1.bf16.msra.mxu1 %v1347_v7  ;;  %v1395_v44 = vld [vmem:[#allocation7 + $0x30] ss:$8 sps:$4 sm:$0xff]   ;;  %v1400_v45 = vld [vmem:[#allocation7 + $0x44] ss:$8 sps:$4 sm:$0xff]   ;;  %v1398_v46 = vld [vmem:[#allocation7 + $0x40] ss:$8 sps:$4 sm:$0xff]  }
  0x7c   :  { %337 = vmatprep.subr.bf16.mxu0 %v1348_v8  ;;  %389 = vmatprep.subr.bf16.mxu1 %v1348_v8  ;;  %v1403_v47 = vld [vmem:[#allocation7 + $0x54] ss:$8 sps:$4 sm:$0xff]   ;;  %v1401_v48 = vld [vmem:[#allocation7 + $0x50] ss:$8 sps:$4 sm:$0xff]   ;;  %v1406_v49 = vld [vmem:[#allocation7 + $0x64] ss:$8 sps:$4 sm:$0xff]  }
  0x7d   :  { %v1404_v50 = vld [vmem:[#allocation7 + $0x60] ss:$8 sps:$4 sm:$0xff]   ;;  %v1409_v51 = vld [vmem:[#allocation7 + $0x74] ss:$8 sps:$4 sm:$0xff]   ;;  %v1407_v52 = vld [vmem:[#allocation7 + $0x70] ss:$8 sps:$4 sm:$0xff]  }
  0x7e   :  { %v1412_v53 = vld [vmem:[#allocation7 + $0x84] ss:$8 sps:$4 sm:$0xff]   ;;  %v1410_v54 = vld [vmem:[#allocation7 + $0x80] ss:$8 sps:$4 sm:$0xff]   ;;  %v1415_v55 = vld [vmem:[#allocation7 + $0x94] ss:$8 sps:$4 sm:$0xff]  }
  0x7f   :  { %338 = vmatpush1.bf16.msra.mxu0 %v1350_v9  ;;  %390 = vmatpush1.bf16.msra.mxu1 %v1350_v9  ;;  %v1413_v56 = vld [vmem:[#allocation7 + $0x90] ss:$8 sps:$4 sm:$0xff]   ;;  %v1418_v57 = vld [vmem:[#allocation7 + $0xa4] ss:$8 sps:$4 sm:$0xff]   ;;  %v1416_v58 = vld [vmem:[#allocation7 + $0xa0] ss:$8 sps:$4 sm:$0xff]  }
  0x80   :  { %339 = vmatprep.subr.bf16.mxu0 %v1351_v10  ;;  %391 = vmatprep.subr.bf16.mxu1 %v1351_v10  ;;  %v1421_v59 = vld [vmem:[#allocation7 + $0xb4] ss:$8 sps:$4 sm:$0xff]   ;;  %v1419_v60 = vld [vmem:[#allocation7 + $0xb0] ss:$8 sps:$4 sm:$0xff]   ;;  %v1424_v61 = vld [vmem:[#allocation7 + $0xc4] ss:$8 sps:$4 sm:$0xff]  }
  0x81   :  { %v1422_v62 = vld [vmem:[#allocation7 + $0xc0] ss:$8 sps:$4 sm:$0xff]   ;;  %v1427_v63 = vld [vmem:[#allocation7 + $0xd4] ss:$8 sps:$4 sm:$0xff]   ;;  %v1425_v0 = vld [vmem:[#allocation7 + $0xd0] ss:$8 sps:$4 sm:$0xff]  }
  0x82   :  { %v1430_v1 = vld [vmem:[#allocation7 + $0xe4] ss:$8 sps:$4 sm:$0xff]   ;;  %v1428_v2 = vld [vmem:[#allocation7 + $0xe0] ss:$8 sps:$4 sm:$0xff]   ;;  %v1433_v3 = vld [vmem:[#allocation7 + $0xf4] ss:$8 sps:$4 sm:$0xff]  }
  0x83   :  { %340 = vmatpush1.bf16.msra.mxu0 %v1353_v11  ;;  %392 = vmatpush1.bf16.msra.mxu1 %v1353_v11  ;;  %v1431_v4 = vld [vmem:[#allocation7 + $0xf0] ss:$8 sps:$4 sm:$0xff]   ;;  %v1440_v7 = vld [vmem:[#allocation8 + $0x4] ss:$8 sps:$4 sm:$0xff]   ;;  %v1438_v10 = vld [vmem:[#allocation8] ss:$8 sps:$4 sm:$0xff]  }
  0x84   :  { %341 = vmatprep.subr.bf16.mxu0 %v1354_v12  ;;  %393 = vmatprep.subr.bf16.mxu1 %v1354_v12  ;;  %v373_v6 = vld [vmem:[#allocation5 + $0x8] sm:$0xff]  ;;  %v1446_v13 = vld [vmem:[#allocation8 + $0x24] ss:$8 sps:$4 sm:$0xff]   ;;  %v1444_v14 = vld [vmem:[#allocation8 + $0x20] ss:$8 sps:$4 sm:$0xff]   ;;  %s1658_s4 = scalar_lea.vmem %s1173_s11, 128 }
  0x85   :  { %v1218_v8 = vcombine.low %v373_v6, %v373_v6  ;;  %v1219_v9 = vcombine.high %v373_v6, %v373_v6  ;;  %v1443_v11 = vld [vmem:[#allocation8 + $0x14] ss:$8 sps:$4 sm:$0xff]   ;;  %v1441_v12 = vld [vmem:[#allocation8 + $0x10] ss:$8 sps:$4 sm:$0xff]   ;;  %p1659_p6 = scmp.ne.s32.totalorder %s1173_s11, %s1658_s4  ;;  %p1664_p8 = scmp.lt.s32.totalorder %s1658_s4, %s1658_s4 }
  0x86   :  { %v1479_v35 = vld [vmem:[#allocation8 + $0xd4] ss:$8 sps:$4 sm:$0xff]  }
  0x87   :  { %342 = vmatpush1.bf16.msra.mxu0 %v1356_v15  ;;  %394 = vmatpush1.bf16.msra.mxu1 %v1356_v15  ;;  %v1449_v15 = vld [vmem:[#allocation8 + $0x34] ss:$8 sps:$4 sm:$0xff]   ;;  %p1665_p9 = por %p1664_p8, %p1663_p7 }
  0x88   :  { %343 = vmatprep.subr.bf16.mxu0 %v1357_v16  ;;  %395 = vmatprep.subr.bf16.mxu1 %v1357_v16  ;;  %v1447_v16 = vld [vmem:[#allocation8 + $0x30] ss:$8 sps:$4 sm:$0xff]  }
  0x89   :  { %413 = vmatprep.mubr.bf16.mxu1 %v1219_v9  ;;  %p1666_p10 = pnand %p1665_p9, %p1659_p6 }
  0x8b   :  { %344 = vmatpush1.bf16.msra.mxu0 %v1359_v17  ;;  %396 = vmatpush1.bf16.msra.mxu1 %v1359_v17  ;;  %v1452_v17 = vld [vmem:[#allocation8 + $0x44] ss:$8 sps:$4 sm:$0xff]  }
  0x8c   :  { %345 = vmatprep.subr.bf16.mxu0 %v1360_v18  ;;  %397 = vmatprep.subr.bf16.mxu1 %v1360_v18  ;;  %v1450_v18 = vld [vmem:[#allocation8 + $0x40] ss:$8 sps:$4 sm:$0xff]  }
  0x8f   :  { %346 = vmatpush1.bf16.msra.mxu0 %v1362_v19  ;;  %398 = vmatpush1.bf16.msra.mxu1 %v1362_v19  ;;  %v1455_v19 = vld [vmem:[#allocation8 + $0x54] ss:$8 sps:$4 sm:$0xff]  }
  0x90   :  { %347 = vmatprep.subr.bf16.mxu0 %v1363_v20  ;;  %399 = vmatprep.subr.bf16.mxu1 %v1363_v20  ;;  %v1453_v20 = vld [vmem:[#allocation8 + $0x50] ss:$8 sps:$4 sm:$0xff]  }
  0x93   :  { %348 = vmatpush1.bf16.msra.mxu0 %v1365_v21  ;;  %400 = vmatpush1.bf16.msra.mxu1 %v1365_v21  ;;  %v1458_v21 = vld [vmem:[#allocation8 + $0x64] ss:$8 sps:$4 sm:$0xff]  }
  0x94   :  { %349 = vmatprep.subr.bf16.mxu0 %v1366_v22  ;;  %401 = vmatprep.subr.bf16.mxu1 %v1366_v22  ;;  %v1456_v22 = vld [vmem:[#allocation8 + $0x60] ss:$8 sps:$4 sm:$0xff]  }
  0x97   :  { %350 = vmatpush1.bf16.msra.mxu0 %v1368_v23  ;;  %402 = vmatpush1.bf16.msra.mxu1 %v1368_v23  ;;  %v1461_v23 = vld [vmem:[#allocation8 + $0x74] ss:$8 sps:$4 sm:$0xff]  }
  0x98   :  { %351 = vmatprep.subr.bf16.mxu0 %v1369_v24  ;;  %403 = vmatprep.subr.bf16.mxu1 %v1369_v24  ;;  %v1459_v24 = vld [vmem:[#allocation8 + $0x70] ss:$8 sps:$4 sm:$0xff]  }
  0x9b   :  { %352 = vmatpush1.bf16.msra.mxu0 %v1371_v25  ;;  %404 = vmatpush1.bf16.msra.mxu1 %v1371_v25  ;;  %v1464_v25 = vld [vmem:[#allocation8 + $0x84] ss:$8 sps:$4 sm:$0xff]  }
  0x9c   :  { %353 = vmatprep.subr.bf16.mxu0 %v1372_v26  ;;  %405 = vmatprep.subr.bf16.mxu1 %v1372_v26  ;;  %v1462_v26 = vld [vmem:[#allocation8 + $0x80] ss:$8 sps:$4 sm:$0xff]  }
  0x9f   :  { %354 = vmatpush1.bf16.msra.mxu0 %v1374_v27  ;;  %406 = vmatpush1.bf16.msra.mxu1 %v1374_v27  ;;  %v1467_v27 = vld [vmem:[#allocation8 + $0x94] ss:$8 sps:$4 sm:$0xff]  }
  0xa0   :  { %355 = vmatprep.subr.bf16.mxu0 %v1375_v28  ;;  %407 = vmatprep.subr.bf16.mxu1 %v1375_v28  ;;  %v1465_v28 = vld [vmem:[#allocation8 + $0x90] ss:$8 sps:$4 sm:$0xff]  }
  0xa3   :  { %356 = vmatpush1.bf16.msra.mxu0 %v1377_v29  ;;  %408 = vmatpush1.bf16.msra.mxu1 %v1377_v29  ;;  %v1470_v29 = vld [vmem:[#allocation8 + $0xa4] ss:$8 sps:$4 sm:$0xff]  }
  0xa4   :  { %357 = vmatprep.subr.bf16.mxu0 %v1378_v30  ;;  %409 = vmatprep.subr.bf16.mxu1 %v1378_v30  ;;  %v1468_v30 = vld [vmem:[#allocation8 + $0xa0] ss:$8 sps:$4 sm:$0xff]  }
  0xa7   :  { %358 = vmatpush1.bf16.msra.mxu0 %v1380_v31  ;;  %410 = vmatpush1.bf16.msra.mxu1 %v1380_v31  ;;  %v1473_v31 = vld [vmem:[#allocation8 + $0xb4] ss:$8 sps:$4 sm:$0xff]  }
  0xa8   :  { %359 = vmatprep.subr.bf16.mxu0 %v1381_v32  ;;  %411 = vmatprep.subr.bf16.mxu1 %v1381_v32  ;;  %v1471_v32 = vld [vmem:[#allocation8 + $0xb0] ss:$8 sps:$4 sm:$0xff]  }
  0xab   :  { %360 = vmatpush1.bf16.msra.mxu0 %v1383_v33  ;;  %412 = vmatpush1.bf16.msra.mxu1 %v1383_v33  ;;  %v1476_v33 = vld [vmem:[#allocation8 + $0xc4] ss:$8 sps:$4 sm:$0xff]  }
  0xac   :  { %636 = vmatprep.subr.bf16.mxu0 %v1388_v34  ;;  %915 = vmatprep.subr.bf16.mxu1 %v1440_v7  ;;  %v1474_v34 = vld [vmem:[#allocation8 + $0xc0] ss:$8 sps:$4 sm:$0xff]  }
  0xae   :  { %362 = vmatmul.mubr.bf16.vlgmr.msra.gmra.mrb[0].mxu0 %v1184_v37  ;;  %414 = vmatmul.mubr.bf16.vlgmr.msra.gmra.mrb[0].mxu1 %v1218_v8  ;;  %v1482_v37 = vld [vmem:[#allocation8 + $0xe4] ss:$8 sps:$4 sm:$0xff]  }
  0xaf   :  { %637 = vmatpush1.bf16.msra.mxu0 %v1386_v36  ;;  %668 = vmatprep.mubr.bf16.mxu0 %v1221_v39  ;;  %v1477_v36 = vld [vmem:[#allocation8 + $0xd0] ss:$8 sps:$4 sm:$0xff]   ;;  %v1485_v39 = vld [vmem:[#allocation8 + $0xf4] ss:$8 sps:$4 sm:$0xff]  }
  0xb0   :  { %638 = vmatprep.subr.bf16.mxu0 %v1391_v38  ;;  %916 = vmatpush1.bf16.msra.mxu1 %v1438_v10  ;;  %v1480_v38 = vld [vmem:[#allocation8 + $0xe0] ss:$8 sps:$4 sm:$0xff]  }
  0xb1   :  { %917 = vmatprep.subr.bf16.mxu1 %v1443_v11 }
  0xb3   :  { %639 = vmatpush1.bf16.msra.mxu0 %v1389_v40  ;;  %v1483_v40 = vld [vmem:[#allocation8 + $0xf0] ss:$8 sps:$4 sm:$0xff]  }
  0xb4   :  { %640 = vmatprep.subr.bf16.mxu0 %v1394_v41  ;;  %918 = vmatpush1.bf16.msra.mxu1 %v1441_v12 }
  0xb5   :  { %919 = vmatprep.subr.bf16.mxu1 %v1446_v13 }
  0xb7   :  { %641 = vmatpush1.bf16.msra.mxu0 %v1392_v42 }
  0xb8   :  { %642 = vmatprep.subr.bf16.mxu0 %v1397_v43  ;;  %920 = vmatpush1.bf16.msra.mxu1 %v1444_v14 }
  0xb9   :  { %921 = vmatprep.subr.bf16.mxu1 %v1449_v15 }
  0xbb   :  { %643 = vmatpush1.bf16.msra.mxu0 %v1395_v44 }
  0xbc   :  { %644 = vmatprep.subr.bf16.mxu0 %v1400_v45  ;;  %922 = vmatpush1.bf16.msra.mxu1 %v1447_v16  ;;  %v152_v45 = vlaneseq }
  0xbd   :  { %923 = vmatprep.subr.bf16.mxu1 %v1452_v17 }
  0xbf   :  { %645 = vmatpush1.bf16.msra.mxu0 %v1398_v46  ;;  %v153_v46 = vshrl.u32 %v152_v45, 7  ;;  %v1494_v45 = vld [vmem:[#allocation11 + $0x60] sm:$0xff]  }
  0xc0   :  { %646 = vmatprep.subr.bf16.mxu0 %v1403_v47  ;;  %924 = vmatpush1.bf16.msra.mxu1 %v1450_v18  ;;  %v457_v47 = vld [vmem:[%s1903_s3] sm:$0x3] }
  0xc1   :  { %925 = vmatprep.subr.bf16.mxu1 %v1455_v19 }
  0xc3   :  { %647 = vmatpush1.bf16.msra.mxu0 %v1401_v48  ;;  %v1855_v48 = vsub.s32 0, %v153_v46 }
  0xc4   :  { %648 = vmatprep.subr.bf16.mxu0 %v1406_v49  ;;  %926 = vmatpush1.bf16.msra.mxu1 %v1453_v20  ;;  %v1857_v49 = vsub.s32 1, %v153_v46  ;;  %v1495_v46 = vld [vmem:[#allocation11 + $0x20] sm:$0xff]  }
  0xc5   :  { %927 = vmatprep.subr.bf16.mxu1 %v1458_v21 }
  0xc7   :  { %649 = vmatpush1.bf16.msra.mxu0 %v1404_v50  ;;  %v462_v50 = vrot.slane %v457_v47, %v1855_v48 }
  0xc8   :  { %650 = vmatprep.subr.bf16.mxu0 %v1409_v51  ;;  %928 = vmatpush1.bf16.msra.mxu1 %v1456_v22  ;;  %v466_v51 = vrot.slane %v457_v47, %v1857_v49  ;;  %v1496_v47 = vld [vmem:[#allocation11 + $0x68] sm:$0xff]  }
  0xc9   :  { %929 = vmatprep.subr.bf16.mxu1 %v1461_v23 }
  0xcb   :  { %651 = vmatpush1.bf16.msra.mxu0 %v1407_v52 }
  0xcc   :  { %652 = vmatprep.subr.bf16.mxu0 %v1412_v53  ;;  %930 = vmatpush1.bf16.msra.mxu1 %v1459_v24 }
  0xcd   :  { %931 = vmatprep.subr.bf16.mxu1 %v1464_v25 }
  0xcf   :  { %653 = vmatpush1.bf16.msra.mxu0 %v1410_v54 }
  0xd0   :  { %654 = vmatprep.subr.bf16.mxu0 %v1415_v55  ;;  %932 = vmatpush1.bf16.msra.mxu1 %v1462_v26 }
  0xd1   :  { %933 = vmatprep.subr.bf16.mxu1 %v1467_v27 }
  0xd3   :  { %655 = vmatpush1.bf16.msra.mxu0 %v1413_v56 }
  0xd4   :  { %656 = vmatprep.subr.bf16.mxu0 %v1418_v57  ;;  %934 = vmatpush1.bf16.msra.mxu1 %v1465_v28 }
  0xd5   :  { %935 = vmatprep.subr.bf16.mxu1 %v1470_v29 }
  0xd7   :  { %657 = vmatpush1.bf16.msra.mxu0 %v1416_v58 }
  0xd8   :  { %658 = vmatprep.subr.bf16.mxu0 %v1421_v59  ;;  %936 = vmatpush1.bf16.msra.mxu1 %v1468_v30 }
  0xd9   :  { %937 = vmatprep.subr.bf16.mxu1 %v1473_v31 }
  0xdb   :  { %659 = vmatpush1.bf16.msra.mxu0 %v1419_v60 }
  0xdc   :  { %660 = vmatprep.subr.bf16.mxu0 %v1424_v61  ;;  %938 = vmatpush1.bf16.msra.mxu1 %v1471_v32 }
  0xdd   :  { %939 = vmatprep.subr.bf16.mxu1 %v1476_v33 }
  0xdf   :  { %661 = vmatpush1.bf16.msra.mxu0 %v1422_v62 }
  0xe0   :  { %662 = vmatprep.subr.bf16.mxu0 %v1427_v63  ;;  %940 = vmatpush1.bf16.msra.mxu1 %v1474_v34 }
  0xe1   :  { %941 = vmatprep.subr.bf16.mxu1 %v1479_v35 }
  0xe3   :  { %663 = vmatpush1.bf16.msra.mxu0 %v1425_v0  ;;  %v150_v0 = vld [vmem:[%s1907_s7] sm:$0x3] }
  0xe4   :  { %664 = vmatprep.subr.bf16.mxu0 %v1430_v1  ;;  %942 = vmatpush1.bf16.msra.mxu1 %v1477_v36 }
  0xe5   :  { %943 = vmatprep.subr.bf16.mxu1 %v1482_v37  ;;  %v1486_v37 = vld [vmem:[#allocation11 + $0x40] sm:$0xff]  }
  0xe7   :  { %665 = vmatpush1.bf16.msra.mxu0 %v1428_v2  ;;  %v1865_v2 = vrot.slane %v150_v0, %v1855_v48 }
  0xe8   :  { %666 = vmatprep.subr.bf16.mxu0 %v1433_v3  ;;  %944 = vmatpush1.bf16.msra.mxu1 %v1480_v38  ;;  %v1487_v38 = vld [vmem:[#allocation11] sm:$0xff]  }
  0xe9   :  { %945 = vmatprep.subr.bf16.mxu1 %v1485_v39  ;;  %v1488_v39 = vld [vmem:[#allocation11 + $0x48] sm:$0xff]  }
  0xeb   :  { %667 = vmatpush1.bf16.msra.mxu0 %v1431_v4  ;;  %v1868_v4 = vrot.slane %v150_v0, %v1857_v49 }
  0xec   :  { %946 = vmatpush1.bf16.msra.mxu1 %v1483_v40  ;;  %1303 = vmatprep.subr.bf16.mxu0 %v1486_v37  ;;  %v1489_v40 = vld [vmem:[#allocation11 + $0x8] sm:$0xff]  }
  0xee   :  { %669 = vmatmul.mubr.bf16.vlgmr.msra.gmra.mrb[4].mxu0 %v1220_v5 }
  0xef   :  { %1304 = vmatpush3.bf16.msra.mxu0 %v1487_v38 }
  0xf0   :  { %1305 = vmatprep.subr.bf16.mxu0 %v1488_v39 }
  0xf3   :  { %1306 = vmatpush3.bf16.msra.mxu0 %v1489_v40 }
 0x181   :  { %v363_v41 = vpop.f32.mrb[0].mxu0  ;;  %v1872_v11 = vpop.f32.mrb[0].mxu1 }
 0x182   :  { %v365_v42 = vpop.f32.mrb[1].mxu0  ;;  %v364_v7 = vadd.f32 %v363_v41, %v1865_v2  ;;  %v1874_v12 = vpop.f32.mrb[1].mxu1  ;;  %v1490_v41 = vld [vmem:[#allocation11 + $0x50] sm:$0xff]  }
 0x183   :  { %v367_v43 = vpop.f32.mrb[2].mxu0  ;;  %v366_v8 = vadd.f32 %v365_v42, %v1868_v4  ;;  %v419_v14 = vpop.f32.mrb[2].mxu1  ;;  %v1491_v42 = vld [vmem:[#allocation11 + $0x10] sm:$0xff]   ;;  %1307 = vmatprep.subr.bf16.mxu0 %v1490_v41 }
 0x184   :  { %v368_v44 = vpop.f32.mrb[3].mxu0  ;;  %v420_v17 = vpop.f32.mrb[3].mxu1  ;;  %1308 = vmatpush3.bf16.msra.mxu0 %v1491_v42  ;;  %v1492_v43 = vld [vmem:[#allocation11 + $0x58] sm:$0xff]  }
 0x185   :  { %v1493_v44 = vld [vmem:[#allocation11 + $0x18] sm:$0xff]   ;;  %1309 = vmatprep.subr.bf16.mxu0 %v1492_v43 }
 0x188   :  { %1310 = vmatpush3.bf16.msra.mxu0 %v1493_v44 }
 0x189   :  { %1311 = vmatprep.subr.bf16.mxu0 %v1494_v45 }
 0x18c   :  { %1312 = vmatpush3.bf16.msra.mxu0 %v1495_v46 }
 0x18d   :  { %1313 = vmatprep.subr.bf16.mxu0 %v1496_v47 }
 0x1c1   :  { %v670_v52 = vpop.f32.mrb[4].mxu0 }
 0x1c2   :  { %v671_v53 = vadd.f32 %v670_v52, %v462_v50  ;;  %v672_v54 = vpop.f32.mrb[5].mxu0  ;;  %v1497_v50 = vld [vmem:[#allocation11 + $0x28] sm:$0xff]   ;;  %v1499_v52 = vld [vmem:[#allocation11 + $0x30] sm:$0xff]  }
 0x1c3   :  { %v673_v55 = vadd.f32 %v672_v54, %v466_v51  ;;  %v674_v56 = vpop.f32.mrb[6].mxu0  ;;  %1314 = vmatpush3.bf16.msra.mxu0 %v1497_v50  ;;  %v1498_v51 = vld [vmem:[#allocation11 + $0x70] sm:$0xff]   ;;  %v1501_v54 = vld [vmem:[#allocation11 + $0x38] sm:$0xff]  }
 0x1c4   :  { %v679_v57 = vand.u32 2147483647, %v671_v53  ;;  %v675_v58 = vpop.f32.mrb[7].mxu0  ;;  %v677_v23 = vmax.f32 %v671_v53, 0.0  ;;  %1315 = vmatprep.subr.bf16.mxu0 %v1498_v51  ;;  %v1500_v53 = vld [vmem:[#allocation11 + $0x78] sm:$0xff]  }
 0x1c5   :  { %v680_v59 = vand.u32 2147483647, %v673_v55  ;;  %v678_v27 = vmax.f32 %v673_v55, 0.0  ;;  %v743_v55 = vld [vmem:[%s1905_s5] sm:$0x3] }
 0x1c6   :  { %v681_v60 = vsub.f32 0.0, %v679_v57  ;;  %v748_v56 = vrot.slane %v743_v55, %v1855_v48  ;;  %v752_v57 = vrot.slane %v743_v55, %v1857_v49  ;;  %v416_v49 = vadd.f32 %v1872_v11, %v1865_v2 }
 0x1c7   :  { %v682_v61 = vsub.f32 0.0, %v680_v59  ;;  %1316 = vmatpush3.bf16.msra.mxu0 %v1499_v52 }
 0x1c8   :  { %v683_v62 = vmul.f32 1.442695, %v681_v60  ;;  %1317 = vmatprep.subr.bf16.mxu0 %v1500_v53 }
 0x1c9   :  { %v685_v63 = vmul.f32 1.442695, %v682_v61 }
 0x1ca   :  { %1502 = vpow2.f32 %v683_v62 }
 0x1cb   :  { %1504 = vpow2.f32 %v685_v63  ;;  %1318 = vmatpush3.bf16.msra.mxu0 %v1501_v54 }
 0x1d4   :  { %v1503_v1 = vpop.eup %1502 }
 0x1d5   :  { %v1505_v3 = vpop.eup %1504  ;;  %v687_v5 = vadd.f32 1.0, %v1503_v1  ;;  %v690_v9 = vmul.f32 -0.5, %v1503_v1  ;;  %v693_v15 = vand.u32 2147483647, %v1503_v1 }
 0x1d6   :  { %v696_v6 = vadd.f32 1.0, %v1505_v3  ;;  %v699_v10 = vmul.f32 -0.5, %v1505_v3  ;;  %v702_v18 = vand.u32 2147483647, %v1505_v3 }
 0x1d7   :  { %1506 = vlog2.f32 %v687_v5  ;;  %v691_v13 = vadd.f32 1.0, %v690_v9  ;;  %vm694_vm0 = vcmp.lt.f32.partialorder %v693_v15, 0.0004427343 }
 0x1d8   :  { %1508 = vlog2.f32 %v696_v6  ;;  %v700_v16 = vadd.f32 1.0, %v699_v10  ;;  %vm703_vm1 = vcmp.lt.f32.partialorder %v702_v18, 0.0004427343 }
 0x1d9   :  { %1510 = vtanh.f32 %v364_v7  ;;  %v692_v22 = vmul.f32 %v1503_v1, %v691_v13  ;;  %v418_v13 = vadd.f32 %v1874_v12, %v1868_v4 }
 0x1da   :  { %1512 = vtanh.f32 %v366_v8  ;;  %v701_v25 = vmul.f32 %v1505_v3, %v700_v16 }
 0x1e1   :  { %v1507_v19 = vpop.eup %1506 }
 0x1e2   :  { %v1509_v20 = vpop.eup %1508  ;;  %v689_v21 = vmul.f32 0.6931472, %v1507_v19 }
 0x1e3   :  { %v698_v24 = vmul.f32 0.6931472, %v1509_v20  ;;  %v1511_v30 = vpop.eup %1510 }
 0x1e4   :  { %v695_v26 = vsel %vm694_vm0, %v692_v22, %v689_v21  ;;  %v1513_v32 = vpop.eup %1512 }
 0x1e5   :  { %v705_v28 = vadd.f32 %v695_v26, %v677_v23  ;;  %v704_v29 = vsel %vm703_vm1, %v701_v25, %v698_v24 }
 0x1e6   :  { %v706_v31 = vadd.f32 %v704_v29, %v678_v27 }
 0x1e7   :  { %v707_v33 = vadd.f32 %v1511_v30, %v705_v28 }
 0x1e8   :  { %v708_v34 = vadd.f32 %v1513_v32, %v706_v31 }
 0x1e9   :  { %v709_v36 = vpack.c.bf16 %v707_v33, %v707_v33 }
 0x1ea   :  { %v710_v35 = vpack.c.bf16 %v708_v34, %v708_v34 }
 0x1ec   :  { %947 = vmatprep.mubr.bf16.mxu1 %v710_v35  ;;  %v1286_v35 = vld [vmem:[%s1909_s9] ss:$0 sm:$0xff] }
 0x1ed   :  { %948 = vmatmul.mubr.bf16.vlgmr.msra.gmra.mrb[4].mxu1 %v709_v36 }
 0x2c0   :  { %v949_v58 = vpop.f32.mrb[4].mxu1 }
 0x2c1   :  { %v950_v59 = vadd.f32 %v949_v58, %v748_v56  ;;  %v951_v60 = vpop.f32.mrb[5].mxu1 }
 0x2c2   :  { %v952_v61 = vadd.f32 %v951_v60, %v752_v57  ;;  %v953_v62 = vpop.f32.mrb[6].mxu1 }
 0x2c3   :  { %v958_v63 = vand.u32 2147483647, %v950_v59  ;;  %v954_v0 = vpop.f32.mrb[7].mxu1  ;;  %v956_v24 = vmax.f32 %v950_v59, 0.0 }
 0x2c4   :  { %v959_v1 = vand.u32 2147483647, %v952_v61  ;;  %v957_v26 = vmax.f32 %v952_v61, 0.0 }
 0x2c5   :  { %v960_v3 = vsub.f32 0.0, %v958_v63 }
 0x2c6   :  { %v961_v5 = vsub.f32 0.0, %v959_v1 }
 0x2c7   :  { %v962_v6 = vmul.f32 1.442695, %v960_v3 }
 0x2c8   :  { %v964_v7 = vmul.f32 1.442695, %v961_v5 }
 0x2c9   :  { %1514 = vpow2.f32 %v962_v6 }
 0x2ca   :  { %1516 = vpow2.f32 %v964_v7 }
 0x2d3   :  { %v1515_v8 = vpop.eup %1514 }
 0x2d4   :  { %v1517_v9 = vpop.eup %1516  ;;  %v966_v10 = vadd.f32 1.0, %v1515_v8  ;;  %v969_v14 = vmul.f32 -0.5, %v1515_v8  ;;  %v972_v17 = vand.u32 2147483647, %v1515_v8 }
 0x2d5   :  { %v975_v48 = vadd.f32 1.0, %v1517_v9  ;;  %v978_v15 = vmul.f32 -0.5, %v1517_v9  ;;  %v981_v19 = vand.u32 2147483647, %v1517_v9 }
 0x2d6   :  { %1518 = vlog2.f32 %v966_v10  ;;  %v970_v16 = vadd.f32 1.0, %v969_v14  ;;  %vm973_vm2 = vcmp.lt.f32.partialorder %v972_v17, 0.0004427343 }
 0x2d7   :  { %1520 = vlog2.f32 %v975_v48  ;;  %v979_v18 = vadd.f32 1.0, %v978_v15  ;;  %vm982_vm3 = vcmp.lt.f32.partialorder %v981_v19, 0.0004427343 }
 0x2d8   :  { %1522 = vtanh.f32 %v416_v49  ;;  %v971_v23 = vmul.f32 %v1515_v8, %v970_v16 }
 0x2d9   :  { %1524 = vtanh.f32 %v418_v13  ;;  %v980_v2 = vmul.f32 %v1517_v9, %v979_v18 }
 0x2e0   :  { %v1519_v20 = vpop.eup %1518 }
 0x2e1   :  { %v1521_v21 = vpop.eup %1520  ;;  %v968_v22 = vmul.f32 0.6931472, %v1519_v20 }
 0x2e2   :  { %v977_v25 = vmul.f32 0.6931472, %v1521_v21  ;;  %v1523_v27 = vpop.eup %1522 }
 0x2e3   :  { %v974_v11 = vsel %vm973_vm2, %v971_v23, %v968_v22  ;;  %v1525_v29 = vpop.eup %1524 }
 0x2e4   :  { %v984_v4 = vadd.f32 %v974_v11, %v956_v24  ;;  %v983_v12 = vsel %vm982_vm3, %v980_v2, %v977_v25 }
 0x2e5   :  { %v985_v28 = vadd.f32 %v983_v12, %v957_v26 }
 0x2e6   :  { %v986_v30 = vadd.f32 %v1523_v27, %v984_v4 }
 0x2e7   :  { %v987_v31 = vadd.f32 %v1525_v29, %v985_v28 }
 0x2e8   :  { %v988_v33 = vpack.c.bf16 %v986_v30, %v986_v30 }
 0x2e9   :  { %v989_v32 = vpack.c.bf16 %v987_v31, %v987_v31 }
 0x2eb   :  { %1157 = vmatprep.mubr.bf16.mxu0 %v989_v32 }
 0x2ec   :  { %1158 = vmatmul.mubr.bf16.vlgmr.msra.gmra.mrb[8].mxu0 %v988_v33 }
 0x3bf   :  { %v1319_v34 = vpop.f32.mrb[8].mxu0 }
 0x3c0   :  { %v1320_v36 = vpop.f32.mrb[9].mxu0 }
 0x3c1   :  { %v1321_v37 = vadd.f32 %v1320_v36, %v1319_v34  ;;  %v1322_v38 = vpop.f32.mrb[10].mxu0 }
 0x3c2   :  { %v1323_v39 = vpop.f32.mrb[11].mxu0 }
 0x3c3   :  { %v1160_v40 = vadd.f32 %v1321_v37, %v1286_v35 }
 0x3c5   :  { %1165 = vst [vmem:[#allocation13] sm:$0xff] %v1160_v40 }
 0x3c6   :  { %1669 = shalt.err (!%p1666_p10)
}
 0x3c7   :  { %s1670_s9 = scalar_lea.hbm %s1910_s10, 128 }
 0x3c8   :  { %p1671_p11 = scmp.ne.s32.totalorder %s1910_s10, %s1670_s9  ;;  %p1674_p12 = scmp.lt.u32.totalorder %s1670_s9, %s1910_s10 }
 0x3ca   :  { %p1676_p13 = pnand %p1674_p12, %p1671_p11 }
 0x3cc   :  { %1679 = shalt.err (!%p1676_p13)
}
 0x3cd   :  { %1175 = dma.vmem_to_hbm [thread:$0]  %s1173_s11, 128, %s1910_s10, [#allocation4]  }
 0x3ce   :  { %1688 = dma.done.wait [#allocation4], 128  }
 0x3cf   :  { %1689 = vsyncadd [#allocation4], 4294967168 }
 0x3d0   :  { %1179 = vsyncpa [#allocation3], 1 }
 0x3d1   :  { %1180 = vsyncpa [#allocation6], 1 }
 0x3d2   :  { %1181 = vsyncpa [#allocation9], 1 }
 0x3d3   :  { %1182 = vsyncpa [#allocation12], 1 }
 0x3d4   :  { %1183 = vsyncpa [#allocation4], 1 }

</bundles_post_ra>
